<compile_context>
chip_gen: v6e
topology: v6e:2x2x1
jax: 0.10.0
libtpu: 0.0.40
codegen_flags: <defaults>
</compile_context>

<pallas_src>
import math
import functools

import jax
import jax.numpy as jnp
from jax.experimental import pallas as pl
from jax.experimental.pallas import tpu as pltpu


def _upsample_linear_kernel(x_ref, w_ref, b_ref, o_ref):
    """One (row-tile, u1) grid step of the fused linear + pixel-shuffle.

    x_ref : (tm, D)           tm = tbh * W rows of the flattened input
    w_ref : (u, D, u*D)       full bf16 weight, resident in VMEM (constant block idx)
    b_ref : (u, 1, u*D)       full f32 bias, resident in VMEM
    o_ref : (tbh, 1, W, u*D)  output block, already in pixel-shuffled layout
    """
    u1 = pl.program_id(1)
    x = x_ref[...].astype(jnp.bfloat16)
    acc = jnp.dot(x, w_ref[u1], preferred_element_type=jnp.float32)
    y = acc + b_ref[u1]
    # (tbh*W, u*D) -> (tbh, 1, W, u*D): pure leading/sublane regroup.
    o_ref[...] = y.reshape(o_ref.shape).astype(o_ref.dtype)


def _vmem_capacity_bytes():
    """Physical VMEM per TensorCore (128 MiB v5e/v6e, 64 MiB v7x)."""
    try:
        cap = getattr(pltpu.get_tpu_info(), "vmem_capacity_bytes", None)
        if cap:
            return int(cap)
    except Exception:
        pass
    return 64 * 1024 * 1024  # conservative fallback: v7x per-TC VMEM


def prepare_upsampling_params(w, b, upscale):
    """(D, D*u*u) weight + (D*u*u,) bias -> resident kernel form.

    Call once outside the jitted forward so the bf16 cast / relayout is not
    re-done (and re-streamed through HBM) on every call.
    """
    D = w.shape[0]
    u = int(upscale)
    assert w.shape == (D, D * u * u) and b.shape == (D * u * u,)
    # Column slab [u1*u*D, (u1+1)*u*D) of w becomes w_res[u1].
    w_res = w.astype(jnp.bfloat16).reshape(D, u, u * D).transpose(1, 0, 2)  # (u, D, u*D)
    b_res = b.astype(jnp.float32).reshape(u, 1, u * D)                      # (u, 1, u*D)
    return w_res, b_res


def upsampling_layer(x, w, b, upscale, *, target_rows=2048, out_dtype=None):
    """x: (B, H, W, D); w: raw (D, D*u*u) or prepared (u, D, u*D); b likewise.

    Returns (B, H*u, W*u, D), matching UpsamplingLayer.forward.
    """
    B, H, W, D = x.shape
    u = int(upscale)
    out_dtype = x.dtype if out_dtype is None else out_dtype

    if w.ndim == 2:
        w_res, b_res = prepare_upsampling_params(w, b, upscale)
    else:
        w_res = w.astype(jnp.bfloat16)
        b_res = b.astype(jnp.float32).reshape(u, 1, u * D)
    assert w_res.shape == (u, D, u * D), w_res.shape

    BH = B * H

    # ---- Row-tile selection: as big as VMEM allows, W-aligned, 8-sublane-aligned.
    # base = smallest W-group keeping tm = tbh*W a multiple of 8 sublanes.
    base = 8 // math.gcd(W, 8)
    tbh = max(base, (max(1, target_rows // W) // base) * base)
    tbh = min(tbh, BH)

    in_item = jnp.dtype(x.dtype).itemsize
    out_item = jnp.dtype(out_dtype).itemsize

    def vmem_est(tbh_):
        tm_ = tbh_ * W
        return (2 * tm_ * D * in_item            # x tile (double-buffered)
                + 2 * u * D * (u * D) * 2        # resident bf16 weight (+ spare buffer)
                + 2 * u * (u * D) * 4            # resident f32 bias
                + 2 * tm_ * (u * D) * out_item   # output tile (double-buffered)
                + tm_ * (u * D) * 4)             # f32 matmul intermediate / bias add

    vmem_budget = int(0.75 * _vmem_capacity_bytes())
    while tbh > base and vmem_est(tbh) > vmem_budget:
        tbh = max(base, ((tbh // 2) // base) * base)
    tm = tbh * W

    x2d = x.reshape(BH * W, D)
    grid = (pl.cdiv(BH, tbh), u)

    # Always set an explicit scoped-VMEM limit (v5e default is only ~16 MiB),
    # capped below the physical capacity of the current generation.
    vmem_limit = min(max(int(1.3 * vmem_est(tbh)) + (4 << 20), 32 << 20), vmem_budget)

    out = pl.pallas_call(
        _upsample_linear_kernel,
        out_shape=jax.ShapeDtypeStruct((BH, u, W, u * D), out_dtype),
        grid_spec=pltpu.PrefetchScalarGridSpec(
            num_scalar_prefetch=0,
            grid=grid,
            in_specs=[
                # x rows: block index constant in u1 (the inner axis) -> one DMA per row tile.
                pl.BlockSpec((tm, D), lambda i, u1: (i, 0)),
                # Full weight, constant block index -> DMA'd once, resident across the grid.
                pl.BlockSpec((u, D, u * D), lambda i, u1: (0, 0, 0)),
                # Full bias, resident.
                pl.BlockSpec((u, 1, u * D), lambda i, u1: (0, 0, 0)),
            ],
            out_specs=pl.BlockSpec((tbh, 1, W, u * D),
                                   lambda i, u1: (i, u1, 0, 0)),
        ),
        compiler_params=pltpu.CompilerParams(
            # No cross-step dependence on either axis: lets multi-TC chips (v7x)
            # shard both the row-tile and the u axis; free on single-TC chips.
            dimension_semantics=("parallel", "parallel"),
            vmem_limit_bytes=vmem_limit,
        ),
    )(x2d, w_res, b_res)

    # (BH, u, W, u*D) and (B, H*u, W*u, D) share the same flat row-major layout
    # -> this reshape is pure metadata (no HBM transpose).
    return out.reshape(B, H * u, W * u, D)


def init_params(key, d_embed, upscale, dtype=jnp.float32):
    # PyTorch Linear: weight (out, in) with xavier_uniform_, bias zeros.
    # We store the transposed weight (in, out) so the kernel does x @ W directly.
    out_features = d_embed * upscale * upscale
    fan_in, fan_out = d_embed, out_features
    bound = math.sqrt(6.0 / (fan_in + fan_out))
    w = jax.random.uniform(key, (d_embed, out_features), dtype=dtype,
                           minval=-bound, maxval=bound)
    b = jnp.zeros((out_features,), dtype=dtype)
    return w, b


def reference_upsampling(x, w, b, upscale):
    # Pure-JAX f32 reference mirroring the PyTorch forward exactly.
    B, H, W, D = x.shape
    u = upscale
    y = jnp.dot(x, w) + b
    y = y.reshape(B, H, W, u, u, D)
    y = jnp.swapaxes(y, 2, 3)
    return y.reshape(B, H * u, W * u, D)


if __name__ == "__main__":
    key = jax.random.PRNGKey(0)
    k_x, k_w, k_b, k_x2 = jax.random.split(key, 4)

    upscale = 2
    d_embed = 128

    # --- primary shape from the module docstring: (n_batch, H, W, d_embed)
    B, H, W = 2, 4, 8
    x = jax.random.normal(k_x, (B, H, W, d_embed), dtype=jnp.float32)
    w, b = init_params(k_w, d_embed, upscale)

    # Pre-cast / relayout the params once, OUTSIDE the jitted forward.
    w_res, b_res = prepare_upsampling_params(w, b, upscale)

    fwd = jax.jit(functools.partial(upsampling_layer, upscale=upscale))
    out = jax.block_until_ready(fwd(x, w_res, b_res))
    ref = reference_upsampling(x, w, b, upscale)
    assert out.shape == (B, H * upscale, W * upscale, d_embed), out.shape
    # bf16 matmul operands with f32 accumulation vs full-f32 reference.
    assert jnp.allclose(out, ref, atol=2e-2, rtol=2e-2), \
        float(jnp.max(jnp.abs(out - ref)))

    # --- nonzero bias, raw (unprepared) params, ragged multi-row-tile grid.
    B2, H2, W2 = 2, 25, 16
    x2 = jax.random.normal(k_x2, (B2, H2, W2, d_embed), dtype=jnp.float32)
    b_rand = 0.1 * jax.random.normal(k_b, (d_embed * upscale * upscale,), jnp.float32)
    fwd2 = jax.jit(functools.partial(upsampling_layer, upscale=upscale, target_rows=256))
    out2 = jax.block_until_ready(fwd2(x2, w, b_rand))
    ref2 = reference_upsampling(x2, w, b_rand, upscale)
    assert out2.shape == (B2, H2 * upscale, W2 * upscale, d_embed), out2.shape
    assert jnp.allclose(out2, ref2, atol=2e-2, rtol=2e-2), \
        float(jnp.max(jnp.abs(out2 - ref2)))

    print("KERNEL_OK")
</pallas_src>

<mosaic_0001>
module attributes {stable_mosaic.version = 11 : i64} {
  func.func @_upsample_linear_kernel(%arg0: i32, %arg1: i32, %arg2: memref<64x128xf32, #tpu.memory_space<vmem>>, %arg3: memref<2x128x256xbf16, #tpu.memory_space<vmem>>, %arg4: memref<2x1x256xf32, #tpu.memory_space<vmem>>, %arg5: memref<8x1x8x256xf32, #tpu.memory_space<vmem>>) attributes {dimension_semantics = [#tpu.dimension_semantics<parallel>, #tpu.dimension_semantics<parallel>], iteration_bounds = array<i64: 1, 2>, scalar_prefetch = 0 : i64, scratch_operands = 0 : i64, tpu.core_type = #tpu.core_type<tc>, window_params = [{transform_indices = @transform_0, window_bounds = array<i64: 64, 128>}, {pipeline_mode = #tpu.pipeline_mode<synchronous>, transform_indices = @transform_1, window_bounds = array<i64: 2, 128, 256>}, {pipeline_mode = #tpu.pipeline_mode<synchronous>, transform_indices = @transform_2, window_bounds = array<i64: 2, 1, 256>}, {transform_indices = @transform_3, window_bounds = array<i64: 8, 1, 8, 256>}]} {
    %c0 = arith.constant 0 : index
    %c0_0 = arith.constant 0 : index
    %0 = vector.load %arg2[%c0, %c0_0] : memref<64x128xf32, #tpu.memory_space<vmem>>, vector<64x128xf32>
    %1 = arith.truncf %0 : vector<64x128xf32> to vector<64x128xbf16>
    %2 = arith.index_cast %arg1 : i32 to index
    %c0_1 = arith.constant 0 : index
    %c0_2 = arith.constant 0 : index
    %3 = vector.load %arg3[%2, %c0_1, %c0_2] : memref<2x128x256xbf16, #tpu.memory_space<vmem>>, vector<1x128x256xbf16>
    %4 = vector.shape_cast %3 : vector<1x128x256xbf16> to vector<128x256xbf16>
    %cst = arith.constant dense<0.000000e+00> : vector<64x256xf32>
    %5 = tpu.matmul %1, %4, %cst {dimension_numbers = #tpu.dot_dimension_numbers<[1], [0], [0], [1], [0, 0, 1, 1], [], []>} : vector<64x128xbf16>, vector<128x256xbf16>, vector<64x256xf32> -> vector<64x256xf32>
    %6 = arith.index_cast %arg1 : i32 to index
    %c0_3 = arith.constant 0 : index
    %c0_4 = arith.constant 0 : index
    %7 = vector.load %arg4[%6, %c0_3, %c0_4] : memref<2x1x256xf32, #tpu.memory_space<vmem>>, vector<1x1x256xf32>
    %8 = vector.shape_cast %7 : vector<1x1x256xf32> to vector<1x256xf32>
    %9 = vector.broadcast %8 : vector<1x256xf32> to vector<64x256xf32>
    %10 = arith.addf %5, %9 : vector<64x256xf32>
    %11 = vector.shape_cast %10 : vector<64x256xf32> to vector<8x1x8x256xf32>
    %c0_5 = arith.constant 0 : index
    %c0_6 = arith.constant 0 : index
    %c0_7 = arith.constant 0 : index
    %c0_8 = arith.constant 0 : index
    %12 = vector.load %arg5[%c0_5, %c0_6, %c0_7, %c0_8] : memref<8x1x8x256xf32, #tpu.memory_space<vmem>>, vector<8x1x8x256xf32>
    tpu.vector_store %arg5[%c0_5, %c0_6, %c0_7, %c0_8], %11 {strides = array<i32>} : memref<8x1x8x256xf32, #tpu.memory_space<vmem>>, vector<8x1x8x256xf32>,
    return
  }
  func.func @transform_0(%arg0: i32, %arg1: i32) -> (i32, i32) {
    %c0_i32 = arith.constant 0 : i32
    %c0_i32_0 = arith.constant 0 : i32
    return %arg0, %c0_i32 : i32, i32
  }
  func.func @transform_1(%arg0: i32, %arg1: i32) -> (i32, i32, i32) {
    %c0_i32 = arith.constant 0 : i32
    %c0_i32_0 = arith.constant 0 : i32
    %c0_i32_1 = arith.constant 0 : i32
    %c0_i32_2 = arith.constant 0 : i32
    return %c0_i32, %c0_i32_0, %c0_i32_1 : i32, i32, i32
  }
  func.func @transform_2(%arg0: i32, %arg1: i32) -> (i32, i32, i32) {
    %c0_i32 = arith.constant 0 : i32
    %c0_i32_0 = arith.constant 0 : i32
    %c0_i32_1 = arith.constant 0 : i32
    %c0_i32_2 = arith.constant 0 : i32
    return %c0_i32, %c0_i32_0, %c0_i32_1 : i32, i32, i32
  }
  func.func @transform_3(%arg0: i32, %arg1: i32) -> (i32, i32, i32, i32) {
    %c0_i32 = arith.constant 0 : i32
    %c0_i32_0 = arith.constant 0 : i32
    %c0_i32_1 = arith.constant 0 : i32
    return %arg0, %arg1, %c0_i32, %c0_i32_0 : i32, i32, i32, i32
  }
}

</mosaic_0001>

<bundles_post_ra>
// kernel: upsampling_layer.1
= control target key start
LH: loop header
LB: loop body
LE: loop exit
PB: predicated region body
PF: predicated region fallthrough
CT: control target
= control target key end

     0   :  { %8 = vsyncpa [#allocation3], 0  ;;  %s982_s0 = inlined_call_operand.hbm [shape: f32[64,128], index: 0, kind: input, shape index: {}]   ;;  %s983_s1 = inlined_call_operand.hbm [shape: bf16[2,128,256], index: 1, kind: input, shape index: {}]   ;;  %s984_s2 = inlined_call_operand.vmem [shape: f32[2,1,256], index: 2, kind: input, shape index: {}]   ;;  %s985_s3 = inlined_call_operand.vmem [shape: f32[8,2,8,256], index: 3, kind: output, shape index: {}]  }
   0x1   :  { %9 = vsyncpa [#allocation5], 0  ;;  %s816_s12 = smov 0   ;;  %s818_s13 = smov 0  }
   0x2   :  { %s820_s14 = smov 0   ;;  %s822_s15 = smov 0  }
   0x3   :  { %s824_s16 = smov 0  }
   0x4 LB: > { %s552_s17 = sadd.s32 4294967295, %s789_s16   ;;  %s24_s18 = sadd.s32 1, %s785_s15  ;;  %s789_s16 = sphi %s824_s16, %s15_s16   ;;  %s785_s15 = sphi %s822_s15, %s993_s15   ;;  %s781_s14 = sphi %s820_s14, %s992_s14   ;;  %s777_s13 = sphi %s818_s13, %s991_s13   ;;  %s773_s12 = sphi %s816_s12, %s990_s12  }
   0x5   : > { %p25_p0 = scmp.ge.s32.totalorder %s24_s18, 2  ;;  %s104_s19 = sadd.s32 1, %s777_s13 }
   0x6   : > { %p114_p1 = scmp.ne.s32.totalorder %s777_s13, %s773_s12  ;;  %p115_p2 = scmp.eq.s32.totalorder %s552_s17, 1 }
   0x7   : > { %s995_s18 = smov (%p25_p0, %s24_s18), 0  ;;  %p554_p4 = scmp.ge.s32.totalorder %s789_s16, 1 }
   0x8   : > { %p848_p3 = por %p115_p2, %p114_p1  ;;  %s100_s21 = ssub.s32 %s785_s15, %s995_s18 }
   0x9   : > { %p128_p5 = scmp.lt.s32.totalorder %s789_s16, 3  ;;  %p102_p6 = scmp.eq.s32.totalorder %s100_s21, 0 }
   0xa   : > { %p860_p8 = scmp.eq.s32.totalorder %s552_s17, 0  ;;  %s791_s25 = smov [#allocation2]  }
   0xb   : > { %p856_p7 = pnand %p554_p4, %p128_p5  ;;  %s143_s26 = sshll.u32 %s791_s25, 4  ;;  %s144_s26 = int_to_ptr.vmem [resolvable:$true] %s143_s26 }
   0xc   : > { %s865_s24 = scalar_select %p102_p6, %s777_s13, %s104_s19  }
   0xd   : > { %p611_p9 = pneg %p856_p7  ;;  %s792_s28 = smov [#allocation4]  }
   0xe   : > { %s156_s29 = sshll.u32 %s792_s28, 4  ;;  %s702_s30 = scalar_lea.vmem %s144_s26, 1024  ;;  %s157_s29 = int_to_ptr.vmem [resolvable:$true] %s156_s29 }
   0xf   : > { %p871_p10 = pnand %p860_p8, %p611_p9  ;;  %p703_p12 = scmp.ne.s32.totalorder %s144_s26, %s702_s30 }
  0x10   : > { %p710_p1 = scmp.lt.s32.totalorder %s144_s26, %s144_s26  ;;  %p711_p2 = scmp.lt.s32.totalorder %s702_s30, %s702_s30 }
  0x11   : > { %p693_p11 = pneg %p871_p10 }
  0x12   : > { %p712_p4 = por %p711_p2, %p710_p1 }
  0x13   : > { %p705_p13 = pnand %p703_p12, %p693_p11 }
  0x15   : > { %p706_p0 = pneg %p705_p13 }
  0x17   : > { %p713_p5 = pnand %p712_p4, %p706_p0 }
  0x19   : > { %716 = shalt.err (!%p713_p5)
}
  0x1a   : > { %s793_s4 = smov 128   ;;  %s794_s5 = smov 8  }
  0x1b   : > { %614 = dma.hbm_to_vmem [thread:$0]  (!%p871_p10), %s982_s0, 1024, %s144_s26, [#allocation3], %s793_s4, %s793_s4, %s794_s5  }
  0x1c   : > { %s728_s8 = scalar_lea.vmem %s157_s29, 4096  ;;  %p736_p13 = scmp.lt.s32.totalorder %s157_s29, %s157_s29 }
  0x1d   : > { %p729_p6 = scmp.ne.s32.totalorder %s157_s29, %s728_s8  ;;  %p737_p1 = scmp.lt.s32.totalorder %s728_s8, %s728_s8 }
  0x1f   : > { %p731_p9 = pnand %p729_p6, %p693_p11  ;;  %p738_p0 = por %p737_p1, %p736_p13 }
  0x21   : > { %p732_p12 = pneg %p731_p9 }
  0x23   : > { %p739_p2 = pnand %p738_p0, %p732_p12 }
  0x25   : > { %742 = shalt.err (!%p739_p2)
}
  0x26   : > { %617 = dma.hbm_to_vmem [thread:$0]  (!%p871_p10), %s983_s1, 4096, %s157_s29, [#allocation5], %s793_s4, %s793_s4, %s794_s5  }
  0x27   : > { %175 = sbr.rel (%p856_p7) target bundleno = 301 (0x12d), region = 32 }
  0x2c   : > { %764 = dma.done.wait (%p860_p8), [#allocation3], 1024  }
  0x2d   : > { %766 = vsyncadd (%p860_p8), [#allocation3], 4294966272 }
  0x2e   : > { %768 = dma.done.wait (%p860_p8), [#allocation5], 4096  }
  0x2f   : > { %770 = vsyncadd (%p860_p8), [#allocation5], 4294963200  ;;  %s585_s11 = sshll.u32 %s781_s14, 7  ;;  %v795_v0 = vmov 0   ;;  %v200_v17 = vld [vmem:[#allocation2] sm:$0xff]  ;;  %v201_v18 = vld [vmem:[#allocation2 + $0x8] sm:$0xff]  ;;  %v235_v29 = vlaneseq }
  0x30   : > { %357 = vmatprep.mubr.bf16.mxu0 %v795_v0  ;;  %377 = vmatprep.mubr.bf16.mxu1 %v795_v0  ;;  %s904_s17 = scalar_lea.vmem [#allocation4], %s585_s11  ;;  %v204_v19 = vld [vmem:[#allocation2 + $0x20] sm:$0xff]  ;;  %v205_v20 = vld [vmem:[#allocation2 + $0x28] sm:$0xff]  ;;  %v208_v21 = vpack.c.bf16 %v201_v18, %v200_v17  ;;  %v202_v23 = vld [vmem:[#allocation2 + $0x10] sm:$0xff]  ;;  %s563_s19 = sshll.u32 %s781_s14, 1 }
  0x31   : > { %v667_v1 = vld [vmem:[%s904_s17 + $0x74] ss:$8 sps:$4 sm:$0xff]   ;;  %v669_v2 = vld [vmem:[%s904_s17 + $0x70] ss:$8 sps:$4 sm:$0xff]   ;;  %v670_v3 = vld [vmem:[%s904_s17 + $0x64] ss:$8 sps:$4 sm:$0xff]   ;;  %v210_v22 = vpack.c.bf16 %v205_v20, %v204_v19  ;;  %s232_s23 = scalar_lea.vmem %s984_s2, %s563_s19 }
  0x32   : > { %325 = vmatprep.subr.bf16.mxu0 %v667_v1  ;;  %587 = vmatprep.subr.bf16.mxu1 %v667_v1  ;;  %v672_v4 = vld [vmem:[%s904_s17 + $0x60] ss:$8 sps:$4 sm:$0xff]   ;;  %v673_v5 = vld [vmem:[%s904_s17 + $0x54] ss:$8 sps:$4 sm:$0xff]   ;;  %v675_v6 = vld [vmem:[%s904_s17 + $0x50] ss:$8 sps:$4 sm:$0xff]  }
  0x33   : > { %326 = vmatpush1.bf16.msra.mxu0 %v669_v2  ;;  %595 = vmatpush1.bf16.msra.mxu1 %v669_v2  ;;  %v676_v7 = vld [vmem:[%s904_s17 + $0x44] ss:$8 sps:$4 sm:$0xff]   ;;  %v678_v8 = vld [vmem:[%s904_s17 + $0x40] ss:$8 sps:$4 sm:$0xff]   ;;  %v679_v9 = vld [vmem:[%s904_s17 + $0x34] ss:$8 sps:$4 sm:$0xff]  }
  0x34   : > { %327 = vmatprep.subr.bf16.mxu0 %v670_v3  ;;  %588 = vmatprep.subr.bf16.mxu1 %v670_v3  ;;  %v681_v10 = vld [vmem:[%s904_s17 + $0x30] ss:$8 sps:$4 sm:$0xff]   ;;  %v682_v11 = vld [vmem:[%s904_s17 + $0x24] ss:$8 sps:$4 sm:$0xff]   ;;  %v684_v12 = vld [vmem:[%s904_s17 + $0x20] ss:$8 sps:$4 sm:$0xff]  }
  0x35   : > { %v685_v13 = vld [vmem:[%s904_s17 + $0x14] ss:$8 sps:$4 sm:$0xff]   ;;  %v687_v14 = vld [vmem:[%s904_s17 + $0x10] ss:$8 sps:$4 sm:$0xff]   ;;  %v688_v15 = vld [vmem:[%s904_s17 + $0x4] ss:$8 sps:$4 sm:$0xff]  }
  0x36   : > { %v690_v16 = vld [vmem:[%s904_s17] ss:$8 sps:$4 sm:$0xff]   ;;  %v203_v24 = vld [vmem:[#allocation2 + $0x18] sm:$0xff]  ;;  %v206_v25 = vld [vmem:[#allocation2 + $0x30] sm:$0xff]  ;;  %v236_v30 = vshrl.u32 %v235_v29, 7  ;;  %s194_s25 = sand.u32 1, %s773_s12  }
  0x37   : > { %328 = vmatpush1.bf16.msra.mxu0 %v672_v4  ;;  %596 = vmatpush1.bf16.msra.mxu1 %v672_v4  ;;  %v207_v26 = vld [vmem:[#allocation2 + $0x38] sm:$0xff]  ;;  %v209_v27 = vpack.c.bf16 %v203_v24, %v202_v23  ;;  %v233_v32 = vld [vmem:[%s232_s23] sm:$0x3]  ;;  %s560_s26 = sshll.u32 %s194_s25, 7  ;;  %s586_s12 = sshll.u32 (%p848_p3), %s781_s14, 4 }
  0x38   : > { %329 = vmatprep.subr.bf16.mxu0 %v673_v5  ;;  %589 = vmatprep.subr.bf16.mxu1 %v673_v5  ;;  %v211_v28 = vpack.c.bf16 %v207_v26, %v206_v25  ;;  %v237_v31 = vsub.s32 0, %v236_v30  ;;  %v241_v33 = vsub.s32 1, %v236_v30  ;;  %s927_s27 = scalar_lea.vmem [#allocation6], %s560_s26  ;;  %s426_s30 = scalar_lea.vmem (%p848_p3), %s985_s3, %s586_s12 }
  0x3a   : > { %v238_v34 = vrot.slane %v233_v32, %v237_v31  ;;  %v242_v35 = vrot.slane %v233_v32, %v241_v33 }
  0x3b   : > { %330 = vmatpush1.bf16.msra.mxu0 %v675_v6  ;;  %597 = vmatpush1.bf16.msra.mxu1 %v675_v6 }
  0x3c   : > { %331 = vmatprep.subr.bf16.mxu0 %v676_v7  ;;  %590 = vmatprep.subr.bf16.mxu1 %v676_v7 }
  0x3f   : > { %332 = vmatpush1.bf16.msra.mxu0 %v678_v8  ;;  %598 = vmatpush1.bf16.msra.mxu1 %v678_v8 }
  0x40   : > { %333 = vmatprep.subr.bf16.mxu0 %v679_v9  ;;  %591 = vmatprep.subr.bf16.mxu1 %v679_v9 }
  0x43   : > { %334 = vmatpush1.bf16.msra.mxu0 %v681_v10  ;;  %599 = vmatpush1.bf16.msra.mxu1 %v681_v10 }
  0x44   : > { %335 = vmatprep.subr.bf16.mxu0 %v682_v11  ;;  %592 = vmatprep.subr.bf16.mxu1 %v682_v11 }
  0x47   : > { %336 = vmatpush1.bf16.msra.mxu0 %v684_v12  ;;  %600 = vmatpush1.bf16.msra.mxu1 %v684_v12 }
  0x48   : > { %337 = vmatprep.subr.bf16.mxu0 %v685_v13  ;;  %593 = vmatprep.subr.bf16.mxu1 %v685_v13 }
  0x4b   : > { %338 = vmatpush1.bf16.msra.mxu0 %v687_v14  ;;  %601 = vmatpush1.bf16.msra.mxu1 %v687_v14 }
  0x4c   : > { %339 = vmatprep.subr.bf16.mxu0 %v688_v15  ;;  %594 = vmatprep.subr.bf16.mxu1 %v688_v15 }
  0x4f   : > { %340 = vmatpush1.bf16.msra.mxu0 %v690_v16  ;;  %602 = vmatpush1.bf16.msra.mxu1 %v690_v16 }
  0x52   : > { %358 = vmatmul.mubr.bf16.vlgmr.msra.gmra.mxu0 %v208_v21  ;;  %378 = vmatmul.mubr.bf16.vlgmr.msra.gmra.mxu1 %v210_v22 }
  0x53   : > { %367 = vmatprep.mubr.bf16.mxu0 %v795_v0  ;;  %387 = vmatprep.mubr.bf16.mxu1 %v795_v0 }
  0x5a   : > { %368 = vmatmul.mubr.bf16.gmra.mxu0 %v209_v27  ;;  %388 = vmatmul.mubr.bf16.gmra.mxu1 %v211_v28 }
 0x112   : > { %v359_v36 = vpop.f32.mrf.mxu0  ;;  %v379_v37 = vpop.f32.mrf.mxu1 }
 0x113   : > { %v360_v38 = vadd.f32 %v359_v36, %v238_v34  ;;  %v380_v39 = vadd.f32 %v379_v37, %v238_v34 }
 0x114   : > { %v361_v40 = vpop.f32.mrf.mxu0  ;;  %v381_v41 = vpop.f32.mrf.mxu1 }
 0x115   : > { %398 = vst [vmem:[%s927_s27] sm:$0xff] %v360_v38  ;;  %406 = vst [vmem:[%s927_s27 + $0x40] sm:$0xff] %v380_v39  ;;  %v362_v42 = vadd.f32 %v361_v40, %v242_v35  ;;  %v382_v43 = vadd.f32 %v381_v41, %v242_v35 }
 0x116   : > { %v363_v44 = vpop.f32.mrf.mxu0  ;;  %v383_v45 = vpop.f32.mrf.mxu1 }
 0x117   : > { %399 = vst [vmem:[%s927_s27 + $0x8] sm:$0xff] %v362_v42  ;;  %407 = vst [vmem:[%s927_s27 + $0x48] sm:$0xff] %v382_v43  ;;  %v364_v46 = vadd.f32 %v363_v44, %v238_v34  ;;  %v384_v47 = vadd.f32 %v383_v45, %v238_v34 }
 0x118   : > { %v365_v48 = vpop.f32.mrf.mxu0  ;;  %v385_v49 = vpop.f32.mrf.mxu1 }
 0x119   : > { %400 = vst [vmem:[%s927_s27 + $0x10] sm:$0xff] %v364_v46  ;;  %408 = vst [vmem:[%s927_s27 + $0x50] sm:$0xff] %v384_v47  ;;  %v366_v50 = vadd.f32 %v365_v48, %v242_v35  ;;  %v386_v51 = vadd.f32 %v385_v49, %v242_v35 }
 0x11a   : > { %v369_v52 = vpop.f32.mrf.mxu0  ;;  %v389_v53 = vpop.f32.mrf.mxu1 }
 0x11b   : > { %401 = vst [vmem:[%s927_s27 + $0x18] sm:$0xff] %v366_v50  ;;  %409 = vst [vmem:[%s927_s27 + $0x58] sm:$0xff] %v386_v51  ;;  %v370_v54 = vadd.f32 %v369_v52, %v238_v34  ;;  %v390_v55 = vadd.f32 %v389_v53, %v238_v34 }
 0x11c   : > { %v371_v56 = vpop.f32.mrf.mxu0  ;;  %v391_v57 = vpop.f32.mrf.mxu1  ;;  %v439_v4 = vld [vmem:[%s927_s27] sm:$0xff] (%p848_p3) }
 0x11d   : > { %402 = vst [vmem:[%s927_s27 + $0x20] sm:$0xff] %v370_v54  ;;  %410 = vst [vmem:[%s927_s27 + $0x60] sm:$0xff] %v390_v55  ;;  %v372_v58 = vadd.f32 %v371_v56, %v242_v35  ;;  %v392_v59 = vadd.f32 %v391_v57, %v242_v35  ;;  %v455_v12 = vld [vmem:[%s927_s27 + $0x40] sm:$0xff] (%p848_p3) }
 0x11e   : > { %v373_v60 = vpop.f32.mrf.mxu0  ;;  %v393_v61 = vpop.f32.mrf.mxu1  ;;  %v441_v5 = vld [vmem:[%s927_s27 + $0x8] sm:$0xff] (%p848_p3)  ;;  %440 = vst [vmem:[%s426_s30] sm:$0xff] (%p848_p3), %v439_v4  ;;  %456 = vst [vmem:[%s426_s30 + $0x80] sm:$0xff] (%p848_p3), %v455_v12 }
 0x11f   : > { %403 = vst [vmem:[%s927_s27 + $0x28] sm:$0xff] %v372_v58  ;;  %411 = vst [vmem:[%s927_s27 + $0x68] sm:$0xff] %v392_v59  ;;  %v374_v62 = vadd.f32 %v373_v60, %v238_v34  ;;  %v394_v63 = vadd.f32 %v393_v61, %v238_v34  ;;  %420 = sbr.rel (!%p848_p3) target bundleno = 301 (0x12d), region = 44  ;;  %v457_v13 = vld [vmem:[%s927_s27 + $0x48] sm:$0xff] (%p848_p3) }
 0x120   : > { %v375_v0 = vpop.f32.mrf.mxu0  ;;  %v395_v1 = vpop.f32.mrf.mxu1  ;;  %v443_v6 = vld [vmem:[%s927_s27 + $0x10] sm:$0xff] (%p848_p3)  ;;  %442 = vst [vmem:[%s426_s30 + $0x8] sm:$0xff] (%p848_p3), %v441_v5  ;;  %458 = vst [vmem:[%s426_s30 + $0x88] sm:$0xff] (%p848_p3), %v457_v13 }
 0x121   : > { %404 = vst [vmem:[%s927_s27 + $0x30] sm:$0xff] %v374_v62  ;;  %412 = vst [vmem:[%s927_s27 + $0x70] sm:$0xff] %v394_v63  ;;  %v376_v2 = vadd.f32 %v375_v0, %v242_v35  ;;  %v396_v3 = vadd.f32 %v395_v1, %v242_v35  ;;  %v459_v14 = vld [vmem:[%s927_s27 + $0x50] sm:$0xff] (%p848_p3) }
 0x122   : > { %v445_v7 = vld [vmem:[%s927_s27 + $0x18] sm:$0xff] (%p848_p3)  ;;  %444 = vst [vmem:[%s426_s30 + $0x20] sm:$0xff] (%p848_p3), %v443_v6  ;;  %460 = vst [vmem:[%s426_s30 + $0xa0] sm:$0xff] (%p848_p3), %v459_v14 }
 0x123   : > { %405 = vst [vmem:[%s927_s27 + $0x38] sm:$0xff] %v376_v2  ;;  %413 = vst [vmem:[%s927_s27 + $0x78] sm:$0xff] %v396_v3  ;;  %v461_v15 = vld [vmem:[%s927_s27 + $0x58] sm:$0xff] (%p848_p3) }
 0x124   : > { %v447_v8 = vld [vmem:[%s927_s27 + $0x20] sm:$0xff]  ;;  %446 = vst [vmem:[%s426_s30 + $0x28] sm:$0xff] %v445_v7  ;;  %462 = vst [vmem:[%s426_s30 + $0xa8] sm:$0xff] %v461_v15 }
 0x125   : > { %448 = vst [vmem:[%s426_s30 + $0x40] sm:$0xff] %v447_v8  ;;  %v463_v16 = vld [vmem:[%s927_s27 + $0x60] sm:$0xff] }
 0x126   : > { %v449_v9 = vld [vmem:[%s927_s27 + $0x28] sm:$0xff]  ;;  %464 = vst [vmem:[%s426_s30 + $0xc0] sm:$0xff] %v463_v16 }
 0x127   : > { %450 = vst [vmem:[%s426_s30 + $0x48] sm:$0xff] %v449_v9  ;;  %v465_v17 = vld [vmem:[%s927_s27 + $0x68] sm:$0xff] }
 0x128   : > { %v451_v10 = vld [vmem:[%s927_s27 + $0x30] sm:$0xff]  ;;  %466 = vst [vmem:[%s426_s30 + $0xc8] sm:$0xff] %v465_v17 }
 0x129   : > { %452 = vst [vmem:[%s426_s30 + $0x60] sm:$0xff] %v451_v10  ;;  %v467_v18 = vld [vmem:[%s927_s27 + $0x70] sm:$0xff] }
 0x12a   : > { %v453_v11 = vld [vmem:[%s927_s27 + $0x38] sm:$0xff]  ;;  %468 = vst [vmem:[%s426_s30 + $0xe0] sm:$0xff] %v467_v18 }
 0x12b   : > { %454 = vst [vmem:[%s426_s30 + $0x68] sm:$0xff] %v453_v11  ;;  %v469_v19 = vld [vmem:[%s927_s27 + $0x78] sm:$0xff] }
 0x12c   : > { %470 = vst [vmem:[%s426_s30 + $0xe8] sm:$0xff] %v469_v19 }
 0x12d PF: > { %s15_s16 = sadd.s32 1, %s789_s16   ;;  %s990_s12 = smov %s777_s13 }
 0x12e   : > { %p12_p3 = scmp.ge.s32.totalorder %s15_s16, 4   ;;  %s991_s13 = smov %s865_s24 }
 0x12f   : > { %s992_s14 = smov %s785_s15  ;;  %s993_s15 = smov %s995_s18 }
 0x130   :  { %14 = sbr.rel (!%p12_p3) target bundleno = 4 (0x4), region = 94 }
 0x135   :  { %486 = vsyncpa [#allocation3], 1 }
 0x136   :  { %488 = vsyncpa [#allocation3 + $0x1], 1 }
 0x137   :  { %489 = vsyncpa [#allocation5], 1 }

</bundles_post_ra>
